<compile_context>
chip_gen: v7x
topology: tpu7x:2x2x1
jax: 0.10.0
libtpu: 0.0.40
codegen_flags: <defaults>
</compile_context>

<pallas_src>
import functools
import re

import jax
import jax.numpy as jnp
from jax.experimental import pallas as pl
from jax.experimental.pallas import tpu as pltpu

LANE = 128


def _round_up(v: int, m: int) -> int:
    return ((v + m - 1) // m) * m


@functools.lru_cache(maxsize=None)
def _tpu_major_version() -> int:
    """Best-effort TPU generation from device_kind ('TPU v5e', 'TPU v6 lite', ...)."""
    try:
        kind = jax.devices()[0].device_kind
        m = re.search(r"(\d+)", kind)
        return int(m.group(1)) if m else 0
    except Exception:
        return 0


@functools.lru_cache(maxsize=None)
def _config():
    """Per-generation (row_tile_max, vmem_limit_bytes, use_core_parallel, native_bf16)."""
    gen = _tpu_major_version()
    if gen >= 7:
        # 64 MiB VMEM/TC, 3.2 TB/s HBM, 2 TensorCores per chip.
        return 16384, 48 << 20, True, True
    if gen == 6:
        # 128 MiB VMEM; 4 MiB block x 4 buffers fits comfortably.
        return 8192, 48 << 20, False, True
    # v5e (16 MiB default scoped VMEM, no bf16 VPU), v5p, older, or unknown.
    return 4096, 48 << 20, False, False


def _make_kernel(compute_f32: bool):
    def kernel(x_ref, o_ref):
        x = x_ref[...]
        if compute_f32:
            # v5e path (no bf16 VPU): single cast-in / cast-out. No-op for f32.
            x = x.astype(jnp.float32)
        r = jnp.maximum(x, 0.0)
        o_ref[...] = (r * r * r).astype(o_ref.dtype)

    return kernel


def _cubic_relu_2d(slab: jax.Array) -> jax.Array:
    """Apply max(0, x)**3 to a [rows, 128] lane-dense slab: one HBM read + one write."""
    rows, lanes = slab.shape
    assert lanes == LANE
    row_tile_max, vmem_limit, use_core_parallel, native_bf16 = _config()

    itemsize = jnp.dtype(slab.dtype).itemsize
    # Packed sublane tile: 8 for 4-byte, 16 for 2-byte, 32 for 1-byte dtypes.
    sublane = max(8, 32 // itemsize)
    row_tile = min(row_tile_max, _round_up(rows, sublane))
    grid_rows = pl.cdiv(rows, row_tile)

    # v7x: shard the row axis across both TensorCores so both issue HBM DMAs.
    # (PARALLEL vs ARBITRARY has near-zero codegen impact; CORE_PARALLEL does.)
    if use_core_parallel and grid_rows >= 2 and grid_rows % 2 == 0:
        semantics = (pltpu.CORE_PARALLEL,)
    else:
        semantics = (pltpu.PARALLEL,)

    # Compute natively in bf16 on v6e/v7x; cast to f32 only on v5e (or for f32 input).
    compute_f32 = (not native_bf16) or slab.dtype == jnp.float32

    n = rows * LANE
    return pl.pallas_call(
        _make_kernel(compute_f32),
        out_shape=jax.ShapeDtypeStruct((rows, LANE), slab.dtype),
        grid_spec=pltpu.PrefetchScalarGridSpec(
            num_scalar_prefetch=0,
            grid=(grid_rows,),
            in_specs=[pl.BlockSpec((row_tile, LANE), lambda i: (i, 0))],
            out_specs=pl.BlockSpec((row_tile, LANE), lambda i: (i, 0)),
        ),
        compiler_params=pltpu.CompilerParams(
            dimension_semantics=semantics,
            vmem_limit_bytes=vmem_limit,
        ),
        cost_estimate=pl.CostEstimate(
            flops=3 * n,                       # max + 2 muls per element
            transcendentals=0,
            bytes_accessed=2 * n * itemsize,   # one read + one write
        ),
    )(slab)


def cubic_relu(x: jax.Array) -> jax.Array:
    """Elementwise max(0, x)**3 via a Pallas TPU kernel. Any shape / float dtype."""
    orig_shape = x.shape
    n = x.size
    if n == 0:
        return x

    if n % LANE == 0:
        # Fast path: no pad, no slice — just reshapes (typical NCHW activations).
        return _cubic_relu_2d(x.reshape(-1, LANE)).reshape(orig_shape)

    # Unaligned path: kernel on the lane-aligned prefix, plain jnp on the <=127
    # element tail, single stitch. (Old pad + slice path tripled HBM traffic.)
    flat = x.reshape(-1)
    aligned = (n // LANE) * LANE
    tail = flat[aligned:]
    tail_out = jnp.maximum(tail, 0.0).astype(tail.dtype) ** 3
    if aligned == 0:
        # Tiny (<128-element) input: a pallas_call here is pure overhead.
        return tail_out.reshape(orig_shape)
    head_out = _cubic_relu_2d(flat[:aligned].reshape(-1, LANE)).reshape(-1)
    return jnp.concatenate([head_out, tail_out]).reshape(orig_shape)


if __name__ == "__main__":
    key = jax.random.PRNGKey(0)

    # NCHW input, small shapes: batch=2, channels=4, spatial=16x16
    # (2*4*16*16 = 2048 elements -> lane-aligned fast path, zero wrapper copies).
    x = jax.random.normal(key, (2, 4, 16, 16), dtype=jnp.float32)
    y = cubic_relu(x)
    jax.block_until_ready(y)
    y_ref = jnp.maximum(x, 0.0) ** 3
    assert y.shape == x.shape and y.dtype == x.dtype
    assert jnp.allclose(y, y_ref, atol=1e-6, rtol=1e-6)

    # The module's real call site: x = linspace(0.01, 0.99, 20).unsqueeze(1) -> (20, 1).
    x_small = jnp.linspace(0.01, 0.99, 20, dtype=jnp.float32).reshape(20, 1)
    y_small = cubic_relu(x_small)
    jax.block_until_ready(y_small)
    assert jnp.allclose(y_small, jnp.maximum(x_small, 0.0) ** 3, atol=1e-6, rtol=1e-6)

    # Larger non-lane-aligned shape exercising the prefix-kernel + jnp-tail stitch.
    x_un = jax.random.normal(jax.random.PRNGKey(1), (3, 5, 43), dtype=jnp.float32)
    y_un = cubic_relu(x_un)
    jax.block_until_ready(y_un)
    assert jnp.allclose(y_un, jnp.maximum(x_un, 0.0) ** 3, atol=1e-6, rtol=1e-6)

    print("KERNEL_OK")
</pallas_src>

<mosaic_0001>
module attributes {stable_mosaic.version = 11 : i64} {
  func.func @kernel(%arg0: i32, %arg1: memref<16x128xf32, #tpu.memory_space<vmem>>, %arg2: memref<16x128xf32, #tpu.memory_space<vmem>>) attributes {dimension_semantics = [#tpu.dimension_semantics<parallel>], iteration_bounds = array<i64: 1>, scalar_prefetch = 0 : i64, scratch_operands = 0 : i64, tpu.core_type = #tpu.core_type<tc>, window_params = [{transform_indices = @transform_0, window_bounds = array<i64: 16, 128>}, {transform_indices = @transform_1, window_bounds = array<i64: 16, 128>}]} {
    %c0 = arith.constant 0 : index
    %c0_0 = arith.constant 0 : index
    %0 = vector.load %arg1[%c0, %c0_0] : memref<16x128xf32, #tpu.memory_space<vmem>>, vector<16x128xf32>
    %cst = arith.constant 0.000000e+00 : f32
    %1 = vector.broadcast %cst : f32 to vector<16x128xf32>
    %2 = arith.maximumf %0, %1 : vector<16x128xf32>
    %3 = arith.mulf %2, %2 : vector<16x128xf32>
    %4 = arith.mulf %3, %2 : vector<16x128xf32>
    %c0_1 = arith.constant 0 : index
    %c0_2 = arith.constant 0 : index
    %5 = vector.load %arg2[%c0_1, %c0_2] : memref<16x128xf32, #tpu.memory_space<vmem>>, vector<16x128xf32>
    tpu.vector_store %arg2[%c0_1, %c0_2], %4 {strides = array<i32>} : memref<16x128xf32, #tpu.memory_space<vmem>>, vector<16x128xf32>,
    return
  }
  func.func @transform_0(%arg0: i32) -> (i32, i32) {
    %c0_i32 = arith.constant 0 : i32
    %c0_i32_0 = arith.constant 0 : i32
    return %arg0, %c0_i32 : i32, i32
  }
  func.func @transform_1(%arg0: i32) -> (i32, i32) {
    %c0_i32 = arith.constant 0 : i32
    %c0_i32_0 = arith.constant 0 : i32
    return %arg0, %c0_i32 : i32, i32
  }
}

</mosaic_0001>

<bundles_post_ra>
// kernel: tpu_custom_call.1
= control target key start
LH: loop header
LB: loop body
LE: loop exit
PB: predicated region body
PF: predicated region fallthrough
CT: control target
= control target key end

     0   :  { %6 = vsyncpa [#allocation3], 0  ;;  %s146_s0 = inlined_call_operand.hbm [shape: f32[16,128], index: 0, kind: input, shape index: {}]   ;;  %s147_s1 = inlined_call_operand.hbm [shape: f32[16,128], index: 1, kind: output, shape index: {}]  }
   0x1   :  { %7 = vsyncpa [#allocation4], 0  ;;  %s102_s6 = smov [#allocation2]   ;;  %s54_s10 = scalar_lea.hbm %s146_s0, 256 }
   0x2   :  { %s13_s7 = sshll.u32 %s102_s6, 4  ;;  %p55_p0 = scmp.ne.s32.totalorder %s146_s0, %s54_s10  ;;  %s14_s7 = int_to_ptr.vmem [resolvable:$true] %s13_s7 }
   0x3   :  { %p58_p1 = scmp.lt.u32.totalorder %s54_s10, %s146_s0 }
   0x5   :  { %p60_p2 = pnand %p58_p1, %p55_p0 }
   0x7   :  { %63 = shalt.err (!%p60_p2)
}
   0x8   :  { %s64_s15 = scalar_lea.vmem %s14_s7, 256  ;;  %p69_p4 = scmp.lt.s32.totalorder %s14_s7, %s14_s7 }
   0x9   :  { %p65_p3 = scmp.ne.s32.totalorder %s14_s7, %s64_s15  ;;  %p70_p5 = scmp.lt.s32.totalorder %s64_s15, %s64_s15 }
   0xb   :  { %p71_p6 = por %p70_p5, %p69_p4 }
   0xd   :  { %p72_p7 = pnand %p71_p6, %p65_p3 }
   0xf   :  { %75 = shalt.err (!%p72_p7)
}
  0x10   :  { %s103_s16 = smov 128   ;;  %s104_s17 = smov 8  }
  0x11   :  { %19 = dma.hbm_to_vmem [thread:$0]  %s146_s0, 256, %s14_s7, [#allocation3], %s103_s16, %s103_s16, %s104_s17  }
  0x12   :  { %98 = dma.done.wait [#allocation3], 256  }
  0x13   :  { %99 = vsyncadd [#allocation3], 4294967040  ;;  %v23_v0 = vld [vmem:[#allocation2] sm:$0xff]  ;;  %v24_v1 = vld [vmem:[#allocation2 + $0x8] sm:$0xff]  ;;  %s105_s20 = smov [#allocation5]  }
  0x14   :  { %v25_v2 = vmax.f32 %v23_v0, 0.0  ;;  %v26_v3 = vmax.f32 %v24_v1, 0.0  ;;  %s38_s21 = sshll.u32 %s105_s20, 4  ;;  %s39_s21 = int_to_ptr.vmem [resolvable:$true] %s38_s21 }
  0x15   :  { %s76_s22 = scalar_lea.vmem %s39_s21, 256  ;;  %p81_p9 = scmp.lt.s32.totalorder %s39_s21, %s39_s21 }
  0x16   :  { %v27_v4 = vmul.f32 %v25_v2, %v25_v2  ;;  %v28_v5 = vmul.f32 %v26_v3, %v26_v3  ;;  %p77_p8 = scmp.ne.s32.totalorder %s39_s21, %s76_s22  ;;  %p82_p10 = scmp.lt.s32.totalorder %s76_s22, %s76_s22 }
  0x18   :  { %v29_v6 = vmul.f32 %v27_v4, %v25_v2  ;;  %v30_v7 = vmul.f32 %v28_v5, %v26_v3  ;;  %p83_p11 = por %p82_p10, %p81_p9 }
  0x1a   :  { %31 = vst [vmem:[#allocation5] sm:$0xff] %v29_v6  ;;  %32 = vst [vmem:[#allocation5 + $0x8] sm:$0xff] %v30_v7  ;;  %p84_p12 = pnand %p83_p11, %p77_p8 }
  0x1c   :  { %87 = shalt.err (!%p84_p12)
}
  0x1d   :  { %s88_s24 = scalar_lea.hbm %s147_s1, 256 }
  0x1e   :  { %p89_p13 = scmp.ne.s32.totalorder %s147_s1, %s88_s24  ;;  %p92_p0 = scmp.lt.u32.totalorder %s88_s24, %s147_s1 }
  0x20   :  { %p94_p1 = pnand %p92_p0, %p89_p13 }
  0x22   :  { %97 = shalt.err (!%p94_p1)
}
  0x23   :  { %44 = dma.vmem_to_hbm [thread:$0]  %s39_s21, 256, %s147_s1, [#allocation4], %s103_s16, %s103_s16, %s104_s17  }
  0x24   :  { %100 = dma.done.wait [#allocation4], 256  }
  0x25   :  { %101 = vsyncadd [#allocation4], 4294967040 }
  0x26   :  { %48 = vsyncpa [#allocation3], 1 }
  0x27   :  { %49 = vsyncpa [#allocation4], 1 }

</bundles_post_ra>
